<compile_context>
chip_gen: v7x
topology: tpu7x:2x2x1
jax: 0.10.0
libtpu: 0.0.40
codegen_flags: <defaults>
</compile_context>

<pallas_src>
import jax
import jax.numpy as jnp
from jax.experimental import pallas as pl
from jax.experimental.pallas import tpu as pltpu

KERNEL = 3  # pooling window (3x3, stride 1, no padding)


def _avgpool_kernel(x_ref, o_ref):
    """Separable 3x3 stride-1 average pool on a (tile_nc, H, W) NCHW block."""
    _, ho, wo = o_ref.shape
    # Single cast of the tile to f32 (no-op for f32 inputs).
    x = x_ref[...].astype(jnp.float32)                          # (tnc, H, W)
    # Vertical 3-tap sum along H (sublane-axis shifts).
    v = x[:, 0:ho] + x[:, 1:ho + 1] + x[:, 2:ho + 2]            # (tnc, Ho, W)
    # Horizontal 3-tap sum along W (lane-axis shifts; XLU has slack — the op
    # is HBM-bandwidth bound, so this cross-lane work is hidden).
    s = v[:, :, 0:wo] + v[:, :, 1:wo + 1] + v[:, :, 2:wo + 2]   # (tnc, Ho, Wo)
    o_ref[...] = (s * (1.0 / (KERNEL * KERNEL))).astype(o_ref.dtype)


def _round_up(v: int, m: int) -> int:
    return -(-v // m) * m


def _vmem_bytes_per_nc_slice(h, w, ho, wo, itemsize) -> int:
    """Pipelined VMEM footprint of ONE nc slice: the double-buffered in/out
    blocks (with (8,128) layout padding of the last two dims) plus the f32
    temps (x cast, v, s) the kernel body materializes."""
    in_buf = _round_up(h, 8) * _round_up(w, 128) * itemsize
    out_buf = _round_up(ho, 8) * _round_up(wo, 128) * itemsize
    f32 = 4
    temps = (_round_up(h, 8) * _round_up(w, 128)        # x (f32 cast)
             + _round_up(ho, 8) * _round_up(w, 128)     # v
             + _round_up(ho, 8) * _round_up(wo, 128)    # s
             ) * f32
    return 2 * (in_buf + out_buf) + temps


def _vmem_budget_and_limit() -> tuple[int, int]:
    """(pipelined-buffer budget, vmem_limit_bytes), sized per TPU generation."""
    vmem_bytes = None
    try:
        vmem_bytes = getattr(pltpu.get_tpu_info(), "vmem_capacity_bytes", None)
    except Exception:
        vmem_bytes = None
    if vmem_bytes is None or vmem_bytes <= 64 * 1024 * 1024:
        # v7x-class (64 MiB / TensorCore) or unknown: stay conservative.
        return 22 * 1024 * 1024, 30 * 1024 * 1024
    # v5e / v6e: 128 MiB VMEM -> big blocks to approach the HBM roofline.
    return 36 * 1024 * 1024, 48 * 1024 * 1024


def _pick_tile_nc(nc: int, per_slice_bytes: int, budget: int) -> int:
    """Largest NC tile that fits the VMEM budget, with >=2 grid steps when
    possible (so 'parallel' shards across both v7x TensorCores), preferring a
    tile that divides NC (no ragged last block)."""
    max_tile = max(1, budget // max(per_slice_bytes, 1))
    tile = min(nc, max_tile)
    if tile >= nc and nc >= 2:
        tile = -(-nc // 2)          # ensure at least 2 grid steps
    # Mild preference for an exact divisor of NC; never shrink below 3/4.
    low = max(1, (3 * tile) // 4)
    for t in range(tile, low - 1, -1):
        if nc % t == 0:
            return t
    return tile
    # NOTE: for very large H*W a single NC slice may exceed the budget
    # (tile_nc == 1); spatial shapes in this module are small so H/W tiling
    # (with a 2-row halo) is intentionally not implemented.


@jax.jit
def avg_pool2d(x: jax.Array) -> jax.Array:
    """AvgPool2d(k=3, s=1, p=0, ceil_mode=True, count_include_pad=False), NCHW."""
    n, c, h, w = x.shape
    ho, wo = h - (KERNEL - 1), w - (KERNEL - 1)
    nc = n * c
    itemsize = jnp.dtype(x.dtype).itemsize

    # Free reshape (merging contiguous dims): no HBM copy, no transpose.
    xr = x.reshape(nc, h, w)

    per_slice = _vmem_bytes_per_nc_slice(h, w, ho, wo, itemsize)
    budget, vmem_limit = _vmem_budget_and_limit()
    tile_nc = _pick_tile_nc(nc, per_slice, budget)
    grid = (pl.cdiv(nc, tile_nc),)

    cost = pl.CostEstimate(
        flops=5 * nc * ho * wo,  # 4 adds + 1 scale per output element
        transcendentals=0,
        bytes_accessed=nc * (h * w + ho * wo) * itemsize,
    )

    out = pl.pallas_call(
        _avgpool_kernel,
        out_shape=jax.ShapeDtypeStruct((nc, ho, wo), x.dtype),
        grid_spec=pltpu.PrefetchScalarGridSpec(
            num_scalar_prefetch=0,
            grid=grid,
            in_specs=[pl.BlockSpec((tile_nc, h, w), lambda i: (i, 0, 0))],
            out_specs=pl.BlockSpec((tile_nc, ho, wo), lambda i: (i, 0, 0)),
        ),
        compiler_params=pltpu.CompilerParams(
            dimension_semantics=("parallel",),
            vmem_limit_bytes=int(vmem_limit),
        ),
        cost_estimate=cost,
    )(xr)

    # Free reshape back to NCHW.
    return out.reshape(n, c, ho, wo)


def _reference_avgpool(x: jax.Array) -> jax.Array:
    """Pure-JAX reference for verification."""
    n, c, h, w = x.shape
    ho, wo = h - (KERNEL - 1), w - (KERNEL - 1)
    acc = jnp.zeros((n, c, ho, wo), jnp.float32)
    for di in range(KERNEL):
        for dj in range(KERNEL):
            acc = acc + x[:, :, di:di + ho, dj:dj + wo].astype(jnp.float32)
    return (acc / (KERNEL * KERNEL)).astype(x.dtype)


if __name__ == "__main__":
    key = jax.random.PRNGKey(0)
    # Small NCHW input consistent with the module's forward.
    x = jax.random.normal(key, (2, 4, 16, 16), dtype=jnp.float32)

    out = jax.block_until_ready(avg_pool2d(x))

    ref = _reference_avgpool(x)
    assert out.shape == (2, 4, 14, 14), out.shape
    assert jnp.allclose(out, ref, atol=1e-5, rtol=1e-5), "mismatch vs reference"

    print("KERNEL_OK")
</pallas_src>

<mosaic_0001>
module attributes {stable_mosaic.version = 11 : i64} {
  func.func @_avgpool_kernel(%arg0: i32, %arg1: memref<4x16x16xf32, #tpu.memory_space<vmem>>, %arg2: memref<4x14x14xf32, #tpu.memory_space<vmem>>) attributes {dimension_semantics = [#tpu.dimension_semantics<parallel>], iteration_bounds = array<i64: 2>, scalar_prefetch = 0 : i64, scratch_operands = 0 : i64, tpu.core_type = #tpu.core_type<tc>, window_params = [{transform_indices = @transform_0, window_bounds = array<i64: 4, 16, 16>}, {transform_indices = @transform_1, window_bounds = array<i64: 4, 14, 14>}]} {
    %c0 = arith.constant 0 : index
    %c0_0 = arith.constant 0 : index
    %c0_1 = arith.constant 0 : index
    %0 = vector.load %arg1[%c0, %c0_0, %c0_1] : memref<4x16x16xf32, #tpu.memory_space<vmem>>, vector<4x16x16xf32>
    %1 = vector.extract_strided_slice %0 {offsets = [0, 0, 0], sizes = [4, 14, 16], strides = [1, 1, 1]} : vector<4x16x16xf32> to vector<4x14x16xf32>
    %2 = vector.extract_strided_slice %0 {offsets = [0, 1, 0], sizes = [4, 14, 16], strides = [1, 1, 1]} : vector<4x16x16xf32> to vector<4x14x16xf32>
    %3 = arith.addf %1, %2 : vector<4x14x16xf32>
    %4 = vector.extract_strided_slice %0 {offsets = [0, 2, 0], sizes = [4, 14, 16], strides = [1, 1, 1]} : vector<4x16x16xf32> to vector<4x14x16xf32>
    %5 = arith.addf %3, %4 : vector<4x14x16xf32>
    %6 = vector.extract_strided_slice %5 {offsets = [0, 0, 0], sizes = [4, 14, 14], strides = [1, 1, 1]} : vector<4x14x16xf32> to vector<4x14x14xf32>
    %7 = vector.extract_strided_slice %5 {offsets = [0, 0, 1], sizes = [4, 14, 14], strides = [1, 1, 1]} : vector<4x14x16xf32> to vector<4x14x14xf32>
    %8 = arith.addf %6, %7 : vector<4x14x14xf32>
    %9 = vector.extract_strided_slice %5 {offsets = [0, 0, 2], sizes = [4, 14, 14], strides = [1, 1, 1]} : vector<4x14x16xf32> to vector<4x14x14xf32>
    %10 = arith.addf %8, %9 : vector<4x14x14xf32>
    %cst = arith.constant 0.111111112 : f32
    %11 = vector.broadcast %cst : f32 to vector<4x14x14xf32>
    %12 = arith.mulf %10, %11 : vector<4x14x14xf32>
    %c0_2 = arith.constant 0 : index
    %c0_3 = arith.constant 0 : index
    %c0_4 = arith.constant 0 : index
    %13 = vector.load %arg2[%c0_2, %c0_3, %c0_4] : memref<4x14x14xf32, #tpu.memory_space<vmem>>, vector<4x14x14xf32>
    tpu.vector_store %arg2[%c0_2, %c0_3, %c0_4], %12 {strides = array<i32>} : memref<4x14x14xf32, #tpu.memory_space<vmem>>, vector<4x14x14xf32>,
    return
  }
  func.func @transform_0(%arg0: i32) -> (i32, i32, i32) {
    %c0_i32 = arith.constant 0 : i32
    %c0_i32_0 = arith.constant 0 : i32
    %c0_i32_1 = arith.constant 0 : i32
    return %arg0, %c0_i32, %c0_i32_0 : i32, i32, i32
  }
  func.func @transform_1(%arg0: i32) -> (i32, i32, i32) {
    %c0_i32 = arith.constant 0 : i32
    %c0_i32_0 = arith.constant 0 : i32
    %c0_i32_1 = arith.constant 0 : i32
    return %arg0, %c0_i32, %c0_i32_0 : i32, i32, i32
  }
}

</mosaic_0001>

<bundles_post_ra>
// kernel: avg_pool2d.1
= control target key start
LH: loop header
LB: loop body
LE: loop exit
PB: predicated region body
PF: predicated region fallthrough
CT: control target
= control target key end

     0   :  { %6 = vsyncpa [#allocation3], 0  ;;  %s670_s0 = inlined_call_operand.hbm [shape: f32[8,16,16], index: 0, kind: input, shape index: {}]   ;;  %s671_s1 = inlined_call_operand.vmem [shape: f32[8,14,14], index: 1, kind: output, shape index: {}]  }
   0x1   :  { %8 = vsyncpa [#allocation3 + $0x1], 0  ;;  %s517_s6 = smov 0   ;;  %s519_s7 = smov 0  }
   0x2   :  { %s521_s8 = smov 0   ;;  %s523_s9 = smov 0  }
   0x3 LB: > { %s375_s10 = sadd.s32 4294967295, %s500_s9   ;;  %s537_s11 = sadd.s32 1, %s500_s9   ;;  %s500_s9 = sphi %s523_s9, %s678_s9   ;;  %s496_s8 = sphi %s521_s8, %s677_s8   ;;  %s492_s7 = sphi %s519_s7, %s676_s7   ;;  %s488_s6 = sphi %s517_s6, %s675_s6  }
   0x4   : > { %s18_s12 = ssub.s32 %s500_s9, %s537_s11  ;;  %s21_s13 = sadd.s32 1, %s496_s8 }
   0x5   : > { %p19_p0 = scmp.eq.s32.totalorder %s18_s12, 0  ;;  %p28_p1 = scmp.ne.s32.totalorder %s496_s8, %s492_s7 }
   0x6   : > { %p29_p2 = scmp.eq.s32.totalorder %s500_s9, 0  ;;  %p34_p3 = scmp.ne.s32.totalorder %s492_s7, %s488_s6 }
   0x7   : > { %s547_s14 = scalar_select %p19_p0, %s496_s8, %s21_s13  }
   0x8   : > { %p30_p4 = por %p29_p2, %p28_p1  ;;  %p35_p5 = scmp.eq.s32.totalorder %s375_s10, 0 }
   0x9   : > { %p399_p6 = scmp.lt.s32.totalorder %s500_s9, 2  ;;  %s84_s16 = sand.u32 1, %s496_s8  }
   0xa   : > { %p552_p7 = por %p35_p5, %p34_p3  ;;  %s379_s17 = sshll.u32 %s84_s16, 6 }
   0xb   : > { %s391_s18 = sshll.u32 %s500_s9, 10  ;;  %s88_s22 = scalar_lea.vmem [#allocation2], %s379_s17 }
   0xc   : > { %s561_s21 = scalar_lea.hbm %s670_s0, %s391_s18  ;;  %s96_s23 = sshll.u32 %s88_s22, 4  ;;  %s563_s23 = int_to_ptr.vmem [resolvable:$true] %s96_s23 }
   0xd   : > { %p565_p8 = pnand %p399_p6, %p30_p4  ;;  %s570_s25 = scalar_lea.sflag [#allocation3], %s84_s16 }
   0xe   : > { %s436_s26 = scalar_lea.hbm %s561_s21, 1024  ;;  %s441_s29 = scalar_lea.hbm %s670_s0, 2048 }
   0xf   : > { %p437_p10 = scmp.ne.s32.totalorder %s561_s21, %s436_s26  ;;  %p438_p11 = pneg %p565_p8 }
  0x10   : > { %p442_p0 = scmp.lt.u32.totalorder %s561_s21, %s670_s0  ;;  %p443_p1 = scmp.lt.u32.totalorder %s441_s29, %s436_s26 }
  0x11   : > { %p439_p12 = pnand %p438_p11, %p437_p10  ;;  %p445_p3 = scmp.lt.u32.totalorder %s436_s26, %s561_s21 }
  0x12   : > { %p444_p2 = por %p443_p1, %p442_p0 }
  0x13   : > { %p440_p13 = pneg %p439_p12 }
  0x14   : > { %p446_p4 = por %p445_p3, %p444_p2 }
  0x16   : > { %p447_p5 = pnand %p446_p4, %p440_p13 }
  0x18   : > { %450 = shalt.err (!%p447_p5)
}
  0x19   : > { %s451_s3 = scalar_lea.vmem %s563_s23, 1024  ;;  %s502_s4 = smov [#allocation2]  }
  0x1a   : > { %p452_p6 = scmp.ne.s32.totalorder %s563_s23, %s451_s3  ;;  %s456_s5 = sshll.u32 %s502_s4, 4  ;;  %s457_s5 = int_to_ptr.vmem [resolvable:$false] %s456_s5 }
  0x1b   : > { %s458_s6 = scalar_lea.vmem %s457_s5, 2048  ;;  %p459_p9 = scmp.lt.s32.totalorder %s563_s23, %s457_s5 }
  0x1c   : > { %p454_p10 = pnand %p452_p6, %p438_p11  ;;  %p460_p0 = scmp.lt.s32.totalorder %s458_s6, %s451_s3 }
  0x1e   : > { %p455_p12 = pneg %p454_p10  ;;  %p461_p1 = por %p460_p0, %p459_p9 }
  0x20   : > { %p462_p2 = pnand %p461_p1, %p455_p12 }
  0x22   : > { %465 = shalt.err (!%p462_p2)
}
  0x23   : > { %s503_s12 = smov 128   ;;  %s504_s13 = smov 8  }
  0x24   : > { %398 = dma.hbm_to_vmem [thread:$0]  (!%p565_p8), %s561_s21, 1024, %s563_s23, %s570_s25, %s503_s12, %s503_s12, %s504_s13  }
  0x25   : > { %p104_p11 = scmp.lt.s32.totalorder %s500_s9, 3  ;;  %p674_p13 = scmp.ge.s32.totalorder %s500_s9, 1 }
  0x27   : > { %p105_p3 = pnand %p674_p13, %p104_p11 }
  0x28   : > { %s110_s16 = sand.u32 (!%p105_p3), 1, %s492_s7  }
  0x29   : > { %108 = sbr.rel (%p105_p3) target bundleno = 205 (0xcd), region = 24  ;;  %s384_s17 = sshll.u32 (!%p105_p3), %s110_s16, 6 }
  0x2a   : > { %s111_s18 = scalar_lea.sflag (!%p105_p3), [#allocation3], %s110_s16  ;;  %s602_s19 = scalar_lea.vmem (!%p105_p3), [#allocation2], %s384_s17 }
  0x30   : > { %483 = dma.done.wait (%p552_p7), %s111_s18, 1024  }
  0x31   : > { %485 = vsyncadd (%p552_p7), %s111_s18, 4294966272  ;;  %v145_v0 = vld [vmem:[%s602_s19 + $0x18] sm:$0xff]  ;;  %v143_v1 = vld [vmem:[%s602_s19 + $0x8] sm:$0xff]  ;;  %vm158_vm0 = vcmask 1046528   ;;  %vm187_vm1 = vcmask 1045504   ;;  %s505_s15 = smov 127  }
  0x32   : > { %v147_v2 = vld [vmem:[%s602_s19 + $0x28] sm:$0xff]  ;;  %v163_v3 = vrot.slane %v145_v0, 1  ;;  %v192_v4 = vrot.slane %v145_v0, 2  ;;  %v160_v5 = vrot.slane %v143_v1, 1  ;;  %v189_v6 = vrot.slane %v143_v1, 2  ;;  %v142_v7 = vld [vmem:[%s602_s19] sm:$0xff] }
  0x33   : > { %v146_v8 = vld [vmem:[%s602_s19 + $0x20] sm:$0xff]  ;;  %v166_v9 = vrot.slane %v147_v2, 1  ;;  %v195_v10 = vrot.slane %v147_v2, 2  ;;  %v159_v11 = vrot.slane %v142_v7, 1  ;;  %v188_v12 = vrot.slane %v142_v7, 2  ;;  %v144_v13 = vld [vmem:[%s602_s19 + $0x10] sm:$0xff] }
  0x34   : > { %v182_v14 = vadd.f32 %v163_v3, %v145_v0  ;;  %v180_v15 = vadd.f32 %v160_v5, %v143_v1  ;;  %v165_v16 = vrot.slane %v146_v8, 1  ;;  %v194_v17 = vrot.slane %v146_v8, 2  ;;  %v149_v26 = vld [vmem:[%s602_s19 + $0x38] sm:$0xff]  ;;  %v148_v27 = vld [vmem:[%s602_s19 + $0x30] sm:$0xff]  ;;  %s506_s20 = smov 126   ;;  %s385_s21 = sshll.u32 %s375_s10, 2 }
  0x35   : > { %v184_v18 = vadd.f32 %v166_v9, %v147_v2  ;;  %v161_v19 = vsel %vm158_vm0, %v159_v11, %v160_v5  ;;  %v190_v20 = vsel %vm187_vm1, %v188_v12, %v189_v6  ;;  %v162_v21 = vrot.slane %v144_v13, 1  ;;  %p136_p7 = scmp.lt.s32.totalorder %s385_s21, 7 }
  0x36   : > { %v616_v22 = vadd.f32 %v192_v4, %v182_v14  ;;  %v209_v23 = vadd.f32 %v189_v6, %v180_v15  ;;  %v179_v24 = vadd.f32 %v161_v19, %v142_v7  ;;  %v167_v25 = vsel %vm158_vm0, %v165_v16, %v166_v9 }
  0x37   : > { %v621_v28 = vadd.f32 %v195_v10, %v184_v18  ;;  %v183_v30 = vadd.f32 %v167_v25, %v146_v8  ;;  %v196_v31 = vsel %vm187_vm1, %v194_v17, %v195_v10  ;;  %v164_v32 = vsel %vm158_vm0, %v162_v21, %v163_v3  ;;  %s680_s21 = smov (!%p136_p7, %s385_s21), 7 }
  0x38   : > { %230 = vrot.lane.b32.xlu1 %v616_v22, %s505_s15  ;;  %226 = vrot.lane.b32.xlu0 %v209_v23, %s505_s15  ;;  %v208_v29 = vadd.f32 %v190_v20, %v179_v24  ;;  %v191_v33 = vrot.slane %v144_v13, 2  ;;  %v169_v34 = vrot.slane %v149_v26, 1  ;;  %v168_v35 = vrot.slane %v148_v27, 1  ;;  %s392_s22 = sshll.u32 %s680_s21, 4 }
  0x39   : > { %v212_v36 = vadd.f32 %v196_v31, %v183_v30  ;;  %v181_v37 = vadd.f32 %v164_v32, %v144_v13  ;;  %v198_v39 = vrot.slane %v149_v26, 2  ;;  %v197_v41 = vrot.slane %v148_v27, 2  ;;  %s637_s25 = scalar_lea.vmem %s671_s1, %s392_s22 }
  0x3a   : > { %v193_v38 = vsel %vm187_vm1, %v191_v33, %v192_v4  ;;  %v170_v40 = vsel %vm158_vm0, %v168_v35, %v169_v34  ;;  %v186_v43 = vadd.f32 %v169_v34, %v149_v26  ;;  %vm298_vm2 = vcmask 111616  }
  0x3b   : > { %v210_v42 = vadd.f32 %v193_v38, %v181_v37  ;;  %v185_v44 = vadd.f32 %v170_v40, %v148_v27  ;;  %v199_v45 = vsel %vm187_vm1, %v197_v41, %v198_v39  ;;  %vm296_vm3 = vcmask 113664  }
  0x3c   : > { %234 = vrot.lane.b32.xlu1 %v621_v28, %s505_s15  ;;  %224 = vrot.lane.b32.xlu0 %v208_v29, %s505_s15  ;;  %v215_v46 = vadd.f32 %v198_v39, %v186_v43 }
  0x3d   : > { %v214_v47 = vadd.f32 %v199_v45, %v185_v44 }
  0x40   : > { %258 = vrot.lane.b32.xlu1 %v209_v23, %s506_s20  ;;  %232 = vrot.lane.b32.xlu0 %v212_v36, %s505_s15 }
  0x44   : > { %228 = vrot.lane.b32.xlu1 %v210_v42, %s505_s15  ;;  %256 = vrot.lane.b32.xlu0 %v208_v29, %s506_s20 }
  0x48   : > { %238 = vrot.lane.b32.xlu1 %v215_v46, %s505_s15  ;;  %236 = vrot.lane.b32.xlu0 %v214_v47, %s505_s15 }
  0x4c   : > { %262 = vrot.lane.b32.xlu1 %v616_v22, %s506_s20  ;;  %260 = vrot.lane.b32.xlu0 %v210_v42, %s506_s20 }
  0x50   : > { %266 = vrot.lane.b32.xlu1 %v621_v28, %s506_s20  ;;  %264 = vrot.lane.b32.xlu0 %v212_v36, %s506_s20 }
  0x54   : > { %270 = vrot.lane.b32.xlu1 %v215_v46, %s506_s20  ;;  %268 = vrot.lane.b32.xlu0 %v214_v47, %s506_s20 }
  0xaa   : > { %v231_v48 = vpop.permute.xlu1 %230  ;;  %v227_v49 = vpop.permute.xlu0 %226 }
  0xab   : > { %v249_v52 = vadd.f32 %v227_v49, %v209_v23  ;;  %v251_v0 = vadd.f32 %v231_v48, %v616_v22 }
  0xae   : > { %v235_v50 = vpop.permute.xlu1 %234  ;;  %v225_v51 = vpop.permute.xlu0 %224 }
  0xaf   : > { %v248_v56 = vadd.f32 %v225_v51, %v208_v29  ;;  %v253_v6 = vadd.f32 %v235_v50, %v621_v28 }
  0xb2   : > { %v259_v53 = vpop.permute.xlu1 %258  ;;  %v233_v54 = vpop.permute.xlu0 %232 }
  0xb3   : > { %v281_v55 = vadd.f32 %v259_v53, %v249_v52  ;;  %v252_v7 = vadd.f32 %v233_v54, %v212_v36 }
  0xb5   : > { %v289_v57 = vmul.f32 0.11111111, %v281_v55 }
  0xb6   : > { %v229_v58 = vpop.permute.xlu1 %228  ;;  %v257_v59 = vpop.permute.xlu0 %256 }
  0xb7   : > { %299 = vst.msk [vmem:[%s637_s25 + $0x8] sm:$0x3f] %vm298_vm2, %v289_v57  ;;  %v280_v60 = vadd.f32 %v257_v59, %v248_v56  ;;  %v250_v1 = vadd.f32 %v229_v58, %v210_v42 }
  0xb9   : > { %v288_v61 = vmul.f32 0.11111111, %v280_v60 }
  0xba   : > { %v239_v62 = vpop.permute.xlu1 %238  ;;  %v237_v63 = vpop.permute.xlu0 %236 }
  0xbb   : > { %297 = vst.msk [vmem:[%s637_s25] sm:$0xff] %vm296_vm3, %v288_v61  ;;  %v255_v14 = vadd.f32 %v239_v62, %v215_v46  ;;  %v254_v15 = vadd.f32 %v237_v63, %v214_v47 }
  0xbe   : > { %v263_v2 = vpop.permute.xlu1 %262  ;;  %v261_v3 = vpop.permute.xlu0 %260 }
  0xbf   : > { %v283_v4 = vadd.f32 %v263_v2, %v251_v0  ;;  %v282_v5 = vadd.f32 %v261_v3, %v250_v1 }
  0xc1   : > { %v291_v8 = vmul.f32 0.11111111, %v283_v4  ;;  %v290_v9 = vmul.f32 0.11111111, %v282_v5 }
  0xc2   : > { %v267_v10 = vpop.permute.xlu1 %266  ;;  %v265_v11 = vpop.permute.xlu0 %264 }
  0xc3   : > { %301 = vst.msk [vmem:[%s637_s25 + $0x18] sm:$0x3f] %vm298_vm2, %v291_v8  ;;  %v285_v12 = vadd.f32 %v267_v10, %v253_v6  ;;  %v284_v13 = vadd.f32 %v265_v11, %v252_v7 }
  0xc4   : > { %300 = vst.msk [vmem:[%s637_s25 + $0x10] sm:$0xff] %vm296_vm3, %v290_v9 }
  0xc5   : > { %v293_v16 = vmul.f32 0.11111111, %v285_v12  ;;  %v292_v17 = vmul.f32 0.11111111, %v284_v13 }
  0xc6   : > { %v271_v18 = vpop.permute.xlu1 %270  ;;  %v269_v19 = vpop.permute.xlu0 %268 }
  0xc7   : > { %303 = vst.msk [vmem:[%s637_s25 + $0x28] sm:$0x3f] %vm298_vm2, %v293_v16  ;;  %v287_v20 = vadd.f32 %v271_v18, %v255_v14  ;;  %v286_v21 = vadd.f32 %v269_v19, %v254_v15 }
  0xc8   : > { %302 = vst.msk [vmem:[%s637_s25 + $0x20] sm:$0xff] %vm296_vm3, %v292_v17 }
  0xc9   : > { %v295_v22 = vmul.f32 0.11111111, %v287_v20  ;;  %v294_v23 = vmul.f32 0.11111111, %v286_v21 }
  0xcb   : > { %305 = vst.msk [vmem:[%s637_s25 + $0x38] sm:$0x3f] %vm298_vm2, %v295_v22 }
  0xcc   : > { %304 = vst.msk [vmem:[%s637_s25 + $0x30] sm:$0xff] %vm296_vm3, %v294_v23 }
  0xcd PF: > { %p11_p8 = scmp.ge.s32.totalorder %s537_s11, 4   ;;  %s675_s6 = smov %s492_s7 }
  0xce   : > { %s676_s7 = smov %s496_s8  ;;  %s677_s8 = smov %s547_s14 }
  0xcf   : > { %s678_s9 = smov %s537_s11  ;;  %13 = sbr.rel (!%p11_p8) target bundleno = 3 (0x3), region = 64 }
  0xd6   :  { %330 = vsyncpa [#allocation3], 1 }
  0xd7   :  { %332 = vsyncpa [#allocation3 + $0x1], 1 }

</bundles_post_ra>
